<compile_context>
chip_gen: v5e
topology: v5e:2x2
jax: 0.10.0
libtpu: 0.0.40
codegen_flags: <defaults>
</compile_context>

<pallas_src>
import math
from functools import partial

import jax
import jax.numpy as jnp
from jax.experimental import pallas as pl
from jax.experimental.pallas import tpu as pltpu


def _gelu_exact(x):
    # Matches torch's default (erf-based) gelu.
    return 0.5 * x * (1.0 + jax.lax.erf(x * (1.0 / math.sqrt(2.0))))


def _round_up(x, m):
    return ((x + m - 1) // m) * m


def _vmem_capacity_bytes():
    """Per-TensorCore VMEM: 128 MiB on v5e/v6e, 64 MiB on v7x."""
    try:
        cap = int(pltpu.get_tpu_info().vmem_capacity_bytes)
        if cap > 0:
            return cap
    except Exception:
        pass
    return 64 << 20  # conservative default (v7x per-TC)


# ------------------------------- kernel -------------------------------------

def brand_color_head_kernel(
    cls_ref,        # [Bp, H]   f32  (resident; constant block index)
    w_dense_ref,    # [H, E]    f32  (resident, dense.weight.T)
    b_dense_ref,    # [1, E]    f32  (resident)
    ln_gamma_ref,   # [1, E]    f32  (resident)
    ln_beta_ref,    # [1, E]    f32  (resident)
    embed_ev_ref,   # [E, tn]   bf16 (streamed over V tiles)
    sim_bias_ref,   # [1, tn]   f32  (streamed over V tiles)
    out_ref,        # [Bp, tn]  f32
    *,
    eps: float,
):
    # dense + gelu + layernorm, recomputed per V tile from resident VMEM params.
    # Cost is ~Bp*H*E MACs per step -- negligible vs the embed-tile DMA -- and
    # it keeps the grid free of cross-step state, so the V axis is "parallel"
    # (v7x megacore splits the stream across both TensorCores).
    x = jnp.dot(cls_ref[...], w_dense_ref[...],
                preferred_element_type=jnp.float32)                # [Bp, E]
    x = x + b_dense_ref[...]
    x = _gelu_exact(x)
    mean = jnp.mean(x, axis=-1, keepdims=True)                     # [Bp, 1]
    xc = x - mean
    var = jnp.mean(xc * xc, axis=-1, keepdims=True)
    x = xc * jax.lax.rsqrt(var + eps) * ln_gamma_ref[...] + ln_beta_ref[...]

    # Per-V-tile matmul: [Bp, E] x [E, tn] on the MXU, f32 accumulation,
    # lane axis = V tile -> lane-dense, unmasked stores.
    sim = jnp.dot(x.astype(jnp.bfloat16), embed_ev_ref[...],
                  preferred_element_type=jnp.float32)              # [Bp, tn]
    out_ref[...] = sim + sim_bias_ref[...]


# --------------------------- weight-load-time prep --------------------------

def prepare_brand_color_head(w_dense, b_dense, ln_gamma, ln_beta, embed_w,
                             sim_bias, *, eps=1e-12, max_batch=8,
                             max_tn=16384):
    """One-time preparation (do this at weight-load time, NOT per forward):
       - transpose/cast/pad the embed table to a bf16 [E, V_pad] slab,
       - choose the V-tile width `tn` and VMEM budget for the current chip.
    w_dense: [H, E] (dense.weight pre-transposed). embed_w: [V, E]."""
    H, E = w_dense.shape
    V, E2 = embed_w.shape
    assert E2 == E, "embed_w emb_dim must match dense output dim"

    b_pad = _round_up(max(max_batch, 1), 8)
    vmem_cap = _vmem_capacity_bytes()

    # Resident params (double-buffered by the default pipeline; they are only
    # fetched once since their block index never changes).
    resident_bytes = 2 * 4 * (b_pad * H + H * E + 3 * 8 * E)
    # Streamed, double-buffered, bytes per V lane:
    #   embed tile (bf16) + sim_bias (f32, 8 sublanes padded) + out (f32).
    per_lane_bytes = 2 * (2 * E + 4 * 8 + 4 * b_pad)

    budget = int(vmem_cap * 0.55)
    tn = (budget - resident_bytes) // per_lane_bytes
    tn = min(tn, max_tn, _round_up(V, 128))
    tn = max(128, (tn // 128) * 128)
    v_pad = _round_up(V, tn)

    vmem_limit = int(min(vmem_cap * 0.9,
                         max(32 << 20,
                             resident_bytes + per_lane_bytes * tn + (16 << 20))))

    embed_ev = jnp.transpose(embed_w).astype(jnp.bfloat16)         # [E, V]
    if v_pad != V:
        embed_ev = jnp.pad(embed_ev, ((0, 0), (0, v_pad - V)))
        sim_bias_p = jnp.pad(sim_bias, (0, v_pad - V))
    else:
        sim_bias_p = sim_bias

    return dict(
        w_dense=w_dense,
        b_dense=b_dense.reshape(1, E),
        ln_gamma=ln_gamma.reshape(1, E),
        ln_beta=ln_beta.reshape(1, E),
        embed_ev=embed_ev,                                         # [E, v_pad] bf16
        sim_bias=sim_bias_p.reshape(1, v_pad),
        eps=float(eps), H=H, E=E, V=V, v_pad=int(v_pad), tn=int(tn),
        vmem_limit_bytes=int(vmem_limit),
    )


# --------------------------------- forward ----------------------------------

def brand_color_head(features, params):
    """features: [B, S, H] f32. params: output of prepare_brand_color_head.
    Returns sim logits [B, V] f32."""
    B, S, H = features.shape
    assert H == params["H"]
    E, V, v_pad, tn = params["E"], params["V"], params["v_pad"], params["tn"]
    nv = v_pad // tn

    # CLS token + sublane-aligned batch pad (cheap wrapper glue).
    cls_tok = features[:, 0, :]                                    # [B, H]
    bp = _round_up(B, 8)
    if bp != B:
        cls_tok = jnp.pad(cls_tok, ((0, bp - B), (0, 0)))

    resident = lambda shape: pl.BlockSpec(shape, lambda j: tuple(0 for _ in shape))

    kernel = pl.pallas_call(
        partial(brand_color_head_kernel, eps=params["eps"]),
        out_shape=jax.ShapeDtypeStruct((bp, v_pad), jnp.float32),
        grid_spec=pltpu.PrefetchScalarGridSpec(
            num_scalar_prefetch=0,
            grid=(nv,),
            in_specs=[
                resident((bp, H)),                                 # cls
                resident((H, E)),                                  # dense weight
                resident((1, E)),                                  # dense bias
                resident((1, E)),                                  # ln gamma
                resident((1, E)),                                  # ln beta
                pl.BlockSpec((E, tn), lambda j: (0, j)),           # embed tile
                pl.BlockSpec((1, tn), lambda j: (0, j)),           # sim_bias tile
            ],
            out_specs=pl.BlockSpec((bp, tn), lambda j: (0, j)),
        ),
        # No cross-step state -> V axis is parallel (v7x uses both TCs).
        compiler_params=pltpu.CompilerParams(
            dimension_semantics=("parallel",),
            vmem_limit_bytes=params["vmem_limit_bytes"],
        ),
    )
    sim_pad = kernel(cls_tok, params["w_dense"], params["b_dense"],
                     params["ln_gamma"], params["ln_beta"],
                     params["embed_ev"], params["sim_bias"])
    return sim_pad[:B, :V]


# ----------------------------- references -----------------------------------

def reference_f32(features, w_dense, b_dense, ln_gamma, ln_beta, embed_w,
                  sim_bias, eps=1e-12):
    """Pure-f32 module semantics."""
    cls_tok = features[:, 0, :]
    x = jnp.dot(cls_tok, w_dense, precision=jax.lax.Precision.HIGHEST) + b_dense
    x = _gelu_exact(x)
    mean = jnp.mean(x, axis=-1, keepdims=True)
    var = jnp.mean((x - mean) ** 2, axis=-1, keepdims=True)
    x = (x - mean) * jax.lax.rsqrt(var + eps) * ln_gamma + ln_beta
    return jnp.dot(x, embed_w.T, precision=jax.lax.Precision.HIGHEST) + sim_bias


def reference_bf16_embed(features, w_dense, b_dense, ln_gamma, ln_beta, embed_w,
                         sim_bias, eps=1e-12):
    """Replicates the kernel's bf16 cast on the embed path (tight comparison)."""
    cls_tok = features[:, 0, :]
    x = jnp.dot(cls_tok, w_dense, precision=jax.lax.Precision.HIGHEST) + b_dense
    x = _gelu_exact(x)
    mean = jnp.mean(x, axis=-1, keepdims=True)
    var = jnp.mean((x - mean) ** 2, axis=-1, keepdims=True)
    x = (x - mean) * jax.lax.rsqrt(var + eps) * ln_gamma + ln_beta
    x_bf = x.astype(jnp.bfloat16)
    emb_bf = embed_w.astype(jnp.bfloat16)
    sim = jnp.dot(x_bf, emb_bf.T, preferred_element_type=jnp.float32)
    return sim + sim_bias


if __name__ == "__main__":
    # Small config consistent with the module's forward:
    #   hidden_size H=32, emb_dim E=32, vocab_size V=64, batch B=2, seq S=8
    B, S, H, E, V = 2, 8, 32, 32, 64
    initializer_range = 0.02
    layer_norm_eps = 1e-12

    key = jax.random.PRNGKey(0)
    k_feat, k_wd, k_emb, k_bd, k_lg, k_lb, k_sb = jax.random.split(key, 7)

    features = jax.random.normal(k_feat, (B, S, H), dtype=jnp.float32)

    # dense: nn.Linear(H, E) weight [E, H] ~ N(0, 0.02); stored pre-transposed [H, E].
    w_dense = (initializer_range
               * jax.random.normal(k_wd, (E, H), dtype=jnp.float32)).T
    # Non-trivial (post-training-like) params to exercise every path.
    b_dense = 0.02 * jax.random.normal(k_bd, (E,), dtype=jnp.float32)
    ln_gamma = 1.0 + 0.1 * jax.random.normal(k_lg, (E,), dtype=jnp.float32)
    ln_beta = 0.02 * jax.random.normal(k_lb, (E,), dtype=jnp.float32)

    # embed_layer: nn.Embedding(V, E) weight ~ N(0, 0.02).
    embed_w = 0.02 * jax.random.normal(k_emb, (V, E), dtype=jnp.float32)
    sim_bias = 0.02 * jax.random.normal(k_sb, (V,), dtype=jnp.float32)

    # One-time weight prep (transpose/cast/pad + per-chip tile sizing).
    params = prepare_brand_color_head(w_dense, b_dense, ln_gamma, ln_beta,
                                      embed_w, sim_bias, eps=layer_norm_eps,
                                      max_batch=B)

    sim = brand_color_head(features, params)
    sim = jax.block_until_ready(sim)
    assert sim.shape == (B, V)
    assert sim.dtype == jnp.float32

    # Tight check vs a cast-aware reference (same bf16 embed path).
    ref_bf = reference_bf16_embed(features, w_dense, b_dense, ln_gamma, ln_beta,
                                  embed_w, sim_bias, eps=layer_norm_eps)
    assert jnp.allclose(sim, ref_bf, atol=1e-3, rtol=1e-3), \
        "mismatch vs bf16-aware reference"

    # Looser check vs the pure-f32 module semantics (bf16 embed quantization only).
    ref = reference_f32(features, w_dense, b_dense, ln_gamma, ln_beta,
                        embed_w, sim_bias, eps=layer_norm_eps)
    assert jnp.allclose(sim, ref, atol=1e-2, rtol=1e-2), \
        "mismatch vs f32 reference"

    print("KERNEL_OK")
</pallas_src>

<mosaic_0001>
module attributes {stable_mosaic.version = 11 : i64} {
  func.func @brand_color_head_kernel(%arg0: i32, %arg1: memref<8x32xf32, #tpu.memory_space<vmem>>, %arg2: memref<32x32xf32, #tpu.memory_space<vmem>>, %arg3: memref<1x32xf32, #tpu.memory_space<vmem>>, %arg4: memref<1x32xf32, #tpu.memory_space<vmem>>, %arg5: memref<1x32xf32, #tpu.memory_space<vmem>>, %arg6: memref<32x128xbf16, #tpu.memory_space<vmem>>, %arg7: memref<1x128xf32, #tpu.memory_space<vmem>>, %arg8: memref<8x128xf32, #tpu.memory_space<vmem>>) attributes {dimension_semantics = [#tpu.dimension_semantics<parallel>], iteration_bounds = array<i64: 1>, scalar_prefetch = 0 : i64, scratch_operands = 0 : i64, tpu.core_type = #tpu.core_type<tc>, window_params = [{pipeline_mode = #tpu.pipeline_mode<synchronous>, transform_indices = @transform_0, window_bounds = array<i64: 8, 32>}, {pipeline_mode = #tpu.pipeline_mode<synchronous>, transform_indices = @transform_1, window_bounds = array<i64: 32, 32>}, {pipeline_mode = #tpu.pipeline_mode<synchronous>, transform_indices = @transform_2, window_bounds = array<i64: 1, 32>}, {pipeline_mode = #tpu.pipeline_mode<synchronous>, transform_indices = @transform_3, window_bounds = array<i64: 1, 32>}, {pipeline_mode = #tpu.pipeline_mode<synchronous>, transform_indices = @transform_4, window_bounds = array<i64: 1, 32>}, {transform_indices = @transform_5, window_bounds = array<i64: 32, 128>}, {transform_indices = @transform_6, window_bounds = array<i64: 1, 128>}, {transform_indices = @transform_7, window_bounds = array<i64: 8, 128>}]} {
    %c0 = arith.constant 0 : index
    %c0_0 = arith.constant 0 : index
    %0 = vector.load %arg1[%c0, %c0_0] : memref<8x32xf32, #tpu.memory_space<vmem>>, vector<8x32xf32>
    %c0_1 = arith.constant 0 : index
    %c0_2 = arith.constant 0 : index
    %1 = vector.load %arg2[%c0_1, %c0_2] : memref<32x32xf32, #tpu.memory_space<vmem>>, vector<32x32xf32>
    %cst = arith.constant dense<0.000000e+00> : vector<8x32xf32>
    %2 = tpu.matmul %0, %1, %cst {dimension_numbers = #tpu.dot_dimension_numbers<[1], [0], [0], [1], [0, 0, 1, 1], [], []>} : vector<8x32xf32>, vector<32x32xf32>, vector<8x32xf32> -> vector<8x32xf32>
    %c0_3 = arith.constant 0 : index
    %c0_4 = arith.constant 0 : index
    %3 = vector.load %arg3[%c0_3, %c0_4] : memref<1x32xf32, #tpu.memory_space<vmem>>, vector<1x32xf32>
    %4 = vector.broadcast %3 : vector<1x32xf32> to vector<8x32xf32>
    %5 = arith.addf %2, %4 : vector<8x32xf32>
    %cst_5 = arith.constant 5.000000e-01 : f32
    %6 = vector.broadcast %cst_5 : f32 to vector<8x32xf32>
    %7 = arith.mulf %6, %5 : vector<8x32xf32>
    %cst_6 = arith.constant 0.707106769 : f32
    %8 = vector.broadcast %cst_6 : f32 to vector<8x32xf32>
    %9 = arith.mulf %5, %8 : vector<8x32xf32>
    %10 = math.erf %9 : vector<8x32xf32>
    %cst_7 = arith.constant 1.000000e+00 : f32
    %11 = vector.broadcast %cst_7 : f32 to vector<8x32xf32>
    %12 = arith.addf %11, %10 : vector<8x32xf32>
    %13 = arith.mulf %7, %12 : vector<8x32xf32>
    %cst_8 = arith.constant dense<0.000000e+00> : vector<8xf32>
    %14 = vector.multi_reduction <add>, %13, %cst_8 [1] : vector<8x32xf32> to vector<8xf32>
    %15 = vector.shape_cast %14 : vector<8xf32> to vector<8x1xf32>
    %cst_9 = arith.constant 3.200000e+01 : f32
    %16 = vector.broadcast %cst_9 : f32 to vector<8x1xf32>
    %17 = arith.divf %15, %16 : vector<8x1xf32>
    %18 = vector.broadcast %17 : vector<8x1xf32> to vector<8x32xf32>
    %19 = arith.subf %13, %18 : vector<8x32xf32>
    %20 = arith.mulf %19, %19 : vector<8x32xf32>
    %cst_10 = arith.constant dense<0.000000e+00> : vector<8xf32>
    %21 = vector.multi_reduction <add>, %20, %cst_10 [1] : vector<8x32xf32> to vector<8xf32>
    %22 = vector.shape_cast %21 : vector<8xf32> to vector<8x1xf32>
    %cst_11 = arith.constant 3.200000e+01 : f32
    %23 = vector.broadcast %cst_11 : f32 to vector<8x1xf32>
    %24 = arith.divf %22, %23 : vector<8x1xf32>
    %cst_12 = arith.constant 9.99999996E-13 : f32
    %25 = vector.broadcast %cst_12 : f32 to vector<8x1xf32>
    %26 = arith.addf %24, %25 : vector<8x1xf32>
    %27 = math.rsqrt %26 : vector<8x1xf32>
    %28 = vector.broadcast %27 : vector<8x1xf32> to vector<8x32xf32>
    %29 = arith.mulf %19, %28 : vector<8x32xf32>
    %c0_13 = arith.constant 0 : index
    %c0_14 = arith.constant 0 : index
    %30 = vector.load %arg4[%c0_13, %c0_14] : memref<1x32xf32, #tpu.memory_space<vmem>>, vector<1x32xf32>
    %31 = vector.broadcast %30 : vector<1x32xf32> to vector<8x32xf32>
    %32 = arith.mulf %29, %31 : vector<8x32xf32>
    %c0_15 = arith.constant 0 : index
    %c0_16 = arith.constant 0 : index
    %33 = vector.load %arg5[%c0_15, %c0_16] : memref<1x32xf32, #tpu.memory_space<vmem>>, vector<1x32xf32>
    %34 = vector.broadcast %33 : vector<1x32xf32> to vector<8x32xf32>
    %35 = arith.addf %32, %34 : vector<8x32xf32>
    %36 = arith.truncf %35 : vector<8x32xf32> to vector<8x32xbf16>
    %c0_17 = arith.constant 0 : index
    %c0_18 = arith.constant 0 : index
    %37 = vector.load %arg6[%c0_17, %c0_18] : memref<32x128xbf16, #tpu.memory_space<vmem>>, vector<32x128xbf16>
    %cst_19 = arith.constant dense<0.000000e+00> : vector<8x128xf32>
    %38 = tpu.matmul %36, %37, %cst_19 {dimension_numbers = #tpu.dot_dimension_numbers<[1], [0], [0], [1], [0, 0, 1, 1], [], []>} : vector<8x32xbf16>, vector<32x128xbf16>, vector<8x128xf32> -> vector<8x128xf32>
    %c0_20 = arith.constant 0 : index
    %c0_21 = arith.constant 0 : index
    %39 = vector.load %arg7[%c0_20, %c0_21] : memref<1x128xf32, #tpu.memory_space<vmem>>, vector<1x128xf32>
    %40 = vector.broadcast %39 : vector<1x128xf32> to vector<8x128xf32>
    %41 = arith.addf %38, %40 : vector<8x128xf32>
    %c0_22 = arith.constant 0 : index
    %c0_23 = arith.constant 0 : index
    %42 = vector.load %arg8[%c0_22, %c0_23] : memref<8x128xf32, #tpu.memory_space<vmem>>, vector<8x128xf32>
    tpu.vector_store %arg8[%c0_22, %c0_23], %41 {strides = array<i32>} : memref<8x128xf32, #tpu.memory_space<vmem>>, vector<8x128xf32>,
    return
  }
  func.func @transform_0(%arg0: i32) -> (i32, i32) {
    %c0_i32 = arith.constant 0 : i32
    %c0_i32_0 = arith.constant 0 : i32
    %c0_i32_1 = arith.constant 0 : i32
    return %c0_i32, %c0_i32_0 : i32, i32
  }
  func.func @transform_1(%arg0: i32) -> (i32, i32) {
    %c0_i32 = arith.constant 0 : i32
    %c0_i32_0 = arith.constant 0 : i32
    %c0_i32_1 = arith.constant 0 : i32
    return %c0_i32, %c0_i32_0 : i32, i32
  }
  func.func @transform_2(%arg0: i32) -> (i32, i32) {
    %c0_i32 = arith.constant 0 : i32
    %c0_i32_0 = arith.constant 0 : i32
    %c0_i32_1 = arith.constant 0 : i32
    return %c0_i32, %c0_i32_0 : i32, i32
  }
  func.func @transform_3(%arg0: i32) -> (i32, i32) {
    %c0_i32 = arith.constant 0 : i32
    %c0_i32_0 = arith.constant 0 : i32
    %c0_i32_1 = arith.constant 0 : i32
    return %c0_i32, %c0_i32_0 : i32, i32
  }
  func.func @transform_4(%arg0: i32) -> (i32, i32) {
    %c0_i32 = arith.constant 0 : i32
    %c0_i32_0 = arith.constant 0 : i32
    %c0_i32_1 = arith.constant 0 : i32
    return %c0_i32, %c0_i32_0 : i32, i32
  }
  func.func @transform_5(%arg0: i32) -> (i32, i32) {
    %c0_i32 = arith.constant 0 : i32
    %c0_i32_0 = arith.constant 0 : i32
    return %c0_i32, %arg0 : i32, i32
  }
  func.func @transform_6(%arg0: i32) -> (i32, i32) {
    %c0_i32 = arith.constant 0 : i32
    %c0_i32_0 = arith.constant 0 : i32
    return %c0_i32, %arg0 : i32, i32
  }
  func.func @transform_7(%arg0: i32) -> (i32, i32) {
    %c0_i32 = arith.constant 0 : i32
    %c0_i32_0 = arith.constant 0 : i32
    return %c0_i32, %arg0 : i32, i32
  }
}

</mosaic_0001>

<bundles_post_ra>
// kernel: tpu_custom_call.1
= control target key start
LH: loop header
LB: loop body
LE: loop exit
PB: predicated region body
PF: predicated region fallthrough
CT: control target
= control target key end

     0   :  { %12 = vsyncpa [#allocation3], 0  ;;  %s456_s0 = inlined_call_operand.hbm [shape: f32[8,32], index: 0, kind: input, shape index: {}]   ;;  %s457_s1 = inlined_call_operand.hbm [shape: f32[32,32], index: 1, kind: input, shape index: {}]   ;;  %s458_s2 = inlined_call_operand.vmem [shape: f32[1,32], index: 2, kind: input, shape index: {}]   ;;  %s459_s3 = inlined_call_operand.vmem [shape: f32[1,32], index: 3, kind: input, shape index: {}]   ;;  %s460_s4 = inlined_call_operand.vmem [shape: f32[1,32], index: 4, kind: input, shape index: {}]   ;;  %s461_s5 = inlined_call_operand.hbm [shape: bf16[32,128], index: 5, kind: input, shape index: {}]   ;;  %s462_s6 = inlined_call_operand.vmem [shape: f32[1,128], index: 6, kind: input, shape index: {}]   ;;  %s463_s7 = inlined_call_operand.hbm [shape: f32[8,128], index: 7, kind: output, shape index: {}]  }
   0x1   :  { %13 = vsyncpa [#allocation6], 0  ;;  %s30_s26 = sshll.u32 %s457_s1, 4  ;;  %s31_s26 = int_to_ptr.hbm [resolvable:$true] %s30_s26 }
   0x2   :  { %14 = vsyncpa [#allocation4], 0  ;;  %s379_s27 = smov [#allocation5]   ;;  %s20_s8 = sshll.u32 %s456_s0, 4  ;;  %s21_s8 = int_to_ptr.hbm [resolvable:$true] %s20_s8 }
   0x3   :  { %s32_s28 = sshll.u32 %s379_s27, 4  ;;  %s380_s9 = smov 128   ;;  %s33_s28 = int_to_ptr.vmem [resolvable:$true] %s32_s28 }
   0x4   :  { %s381_s10 = smov 8   ;;  %s382_s11 = smov [#allocation2]  }
   0x5   :  { %38 = dma.hbm_to_vmem [thread:$0]  %s31_s26, 512, %s33_s28, [#allocation6], %s380_s9, %s380_s9, %s381_s10  }
   0x6   :  { %s22_s12 = sshll.u32 %s382_s11, 4  ;;  %s49_s15 = sshll.u32 %s461_s5, 4  ;;  %s23_s12 = int_to_ptr.vmem [resolvable:$true] %s22_s12  ;;  %s50_s15 = int_to_ptr.hbm [resolvable:$true] %s49_s15 }
   0x7   :  { %25 = dma.hbm_to_vmem [thread:$0]  %s21_s8, 128, %s23_s12, [#allocation3]  }
   0x8   :  { %s383_s1 = smov [#allocation7]   ;;  %s384_s17 = smov 64  }
   0x9   :  { %s51_s16 = sshll.u32 %s383_s1, 4  ;;  %s385_s18 = smov 4   ;;  %s52_s16 = int_to_ptr.vmem [resolvable:$true] %s51_s16 }
   0xa   :  { %57 = dma.hbm_to_vmem [thread:$0]  %s50_s15, 256, %s52_s16, [#allocation6], %s384_s17, %s384_s17, %s385_s18  }
   0xb   :  { %373 = dma.done.wait [#allocation3], 128  }
   0xc   :  { %374 = vsyncadd [#allocation3], 4294967168 }
   0xd   :  { %375 = dma.done.wait [#allocation6], 768  }
   0xe   :  { %376 = vsyncadd [#allocation6], 4294966528  ;;  %v77_v0 = vld [vmem:[#allocation5 + $0x18] sm:$0xff]  ;;  %v76_v1 = vld [vmem:[#allocation5 + $0x10] sm:$0xff]  ;;  %vm82_vm0 = vcmask 261120   ;;  %v386_v48 = vmov 32.0  }
   0xf   :  { %98 = vmatpush.msra.mxu0 %v77_v0  ;;  %v75_v2 = vld [vmem:[#allocation5 + $0x8] sm:$0xff]  ;;  %v74_v3 = vld [vmem:[#allocation5] sm:$0xff]  ;;  %v73_v4 = vld [vmem:[#allocation2] sm:$0xff]  ;;  %s387_s24 = smov [#allocation8]  }
  0x10   :  { %v267_v5 = vld [vmem:[%s458_s2] ss:$0 sm:$0xff]  ;;  %v257_v60 = vld [vmem:[#allocation7 + $0x8] sm:$0xff]  ;;  %v256_v61 = vld [vmem:[#allocation7] sm:$0xff]  ;;  %s232_s25 = sshll.u32 %s387_s24, 4  ;;  %s233_s25 = int_to_ptr.vmem [resolvable:$true] %s232_s25 }
  0x11   :  { %99 = vmatpush.msra.mxu0 %v76_v1  ;;  %219 = vmatpush.bf16.msra.mxu1 %v257_v60 }
  0x13   :  { %100 = vmatpush.msra.mxu0 %v75_v2 }
  0x15   :  { %101 = vmatpush.msra.mxu0 %v74_v3  ;;  %220 = vmatpush.bf16.msra.mxu1 %v256_v61 }
  0x16   :  { %245 = vmatmul.msk.f32.vlgmr.msra.gmra.mxu0 %vm82_vm0, %v73_v4 }
  0x93   :  { %v103_v6 = vpop.f32.mrf.mxu0 }
  0x94   :  { %v104_v7 = vadd.f32 %v267_v5, %v103_v6 }
  0x96   :  { %v107_v8 = vmul.f32 0.70710677, %v104_v7  ;;  %v106_v44 = vmul.f32 0.5, %v104_v7  ;;  %v268_v7 = vld [vmem:[%s459_s3] ss:$0 sm:$0xff]  ;;  %s234_s3 = sshll.u32 %s463_s7, 4  ;;  %s235_s3 = int_to_ptr.hbm [resolvable:$true] %s234_s3 }
  0x98   :  { %v108_v9 = vmul.f32 %v107_v8, %v107_v8 }
  0x9a   :  { %v109_v10 = vmin.f32 %v108_v9, 16.0 }
  0x9c   :  { %v110_v11 = vmul.f32 2.1237322e-06, %v109_v10  ;;  %v121_v12 = vmul.f32 3.8918573e-05, %v109_v10 }
  0x9e   :  { %v111_v13 = vadd.f32 0.00028619796, %v110_v11  ;;  %v122_v14 = vadd.f32 0.001143296, %v121_v12 }
  0xa0   :  { %v112_v15 = vmul.f32 %v111_v13, %v109_v10  ;;  %v123_v16 = vmul.f32 %v122_v14, %v109_v10  ;;  %v270_v14 = vld [vmem:[%s462_s6] ss:$0 sm:$0xff] }
  0xa2   :  { %v124_v17 = vadd.f32 0.014752088, %v123_v16  ;;  %v113_v18 = vadd.f32 0.0036580483, %v112_v15 }
  0xa4   :  { %v125_v19 = vmul.f32 %v124_v17, %v109_v10  ;;  %v114_v21 = vmul.f32 %v113_v18, %v109_v10 }
  0xa6   :  { %v126_v20 = vadd.f32 0.112945676, %v125_v19  ;;  %v115_v24 = vadd.f32 0.05243302, %v114_v21 }
  0xa8   :  { %v127_v22 = vmul.f32 %v126_v20, %v109_v10  ;;  %v116_v27 = vmul.f32 %v115_v24, %v109_v10 }
  0xaa   :  { %v128_v23 = vadd.f32 0.4994258, %v127_v22  ;;  %v117_v28 = vadd.f32 0.18741608, %v116_v27 }
  0xac   :  { %v129_v25 = vmul.f32 %v128_v23, %v109_v10  ;;  %v118_v30 = vmul.f32 %v117_v28, %v109_v10  ;;  %v269_v10 = vld [vmem:[%s460_s4] ss:$0 sm:$0xff] }
  0xae   :  { %v130_v26 = vadd.f32 1.0, %v129_v25  ;;  %v119_v34 = vadd.f32 1.1283791, %v118_v30 }
  0xb0   :  { %271 = vrcp.f32 %v130_v26  ;;  %v142_v33 = vand.u32 2147483648, %v130_v26  ;;  %v140_v36 = vand.u32 2147483647, %v130_v26  ;;  %vm136_vm2 = vweird.f32 %v130_v26 }
  0xb1   :  { %v120_v39 = vmul.f32 %v119_v34, %v107_v8  ;;  %273 = vrcp.f32 %v386_v48 }
  0xb2   :  { %v143_v38 = vor.u32 1.1754944e-38, %v142_v33  ;;  %vm141_vm4 = vcmp.eq.f32.partialorder %v140_v36, 8.507059e+37 }
  0xb6   :  { %v272_v29 = vpop.eup %271 }
  0xb7   :  { %v132_v31 = vmul.f32 %v272_v29, %v130_v26  ;;  %vm137_vm1 = vweird.f32 %v272_v29  ;;  %v274_v49 = vpop.eup %273 }
  0xb8   :  { %vm138_vm3 = vmor %vm136_vm2, %vm137_vm1  ;;  %v154_v50 = vmul.f32 32.0, %v274_v49  ;;  %vm158_vm5 = vweird.f32 %v274_v49 }
  0xb9   :  { %v133_v32 = vsub.f32 1.0, %v132_v31 }
  0xba   :  { %v155_v51 = vsub.f32 1.0, %v154_v50 }
  0xbb   :  { %v134_v35 = vmul.f32 %v272_v29, %v133_v32 }
  0xbc   :  { %v156_v52 = vmul.f32 %v274_v49, %v155_v51 }
  0xbd   :  { %v135_v37 = vadd.f32 %v272_v29, %v134_v35 }
  0xbe   :  { %v157_v53 = vadd.f32 %v274_v49, %v156_v52 }
  0xbf   :  { %v139_v40 = vsel %vm138_vm3, %v272_v29, %v135_v37 }
  0xc0   :  { %v144_v41 = vsel %vm141_vm4, %v143_v38, %v139_v40  ;;  %v159_v54 = vsel %vm158_vm5, %v274_v49, %v157_v53 }
  0xc1   :  { %v145_v42 = vmul.f32 %v144_v41, %v120_v39 }
  0xc3   :  { %v246_v43 = vclamps-f32 %v145_v42, 1.0 }
  0xc5   :  { %v148_v45 = vadd.f32 1.0, %v246_v43 }
  0xc7   :  { %v149_v46 = vmul.f32 %v148_v45, %v106_v44 }
  0xc9   :  { %v150_v47 = vsel %vm82_vm0, %v149_v46, 0.0 }
  0xca   :  { %151 = vadd.xlane.f32.xlu0 %v150_v47 }
 0x13d   :  { %v152_v55 = vpop.xlane.xlu0 %151 }
 0x13e   :  { %v160_v56 = vmul.f32 %v159_v54, %v152_v55 }
 0x140   :  { %v161_v57 = vsub.f32 %v149_v46, %v160_v56 }
 0x142   :  { %v162_v58 = vmul.f32 %v161_v57, %v161_v57 }
 0x144   :  { %v163_v59 = vsel %vm82_vm0, %v162_v58, 0.0 }
 0x145   :  { %164 = vadd.xlane.f32.xlu0 %v163_v59 }
 0x1b8   :  { %v165_v62 = vpop.xlane.xlu0 %164 }
 0x1b9   :  { %v166_v63 = vmul.f32 %v165_v62, %v159_v54 }
 0x1bb   :  { %v167_v0 = vadd.f32 1e-12, %v166_v63 }
 0x1bd   :  { %275 = vrsqrt.f32 %v167_v0  ;;  %vm174_vm7 = vweird.f32 %v167_v0 }
 0x1c3   :  { %v276_v1 = vpop.eup %275 }
 0x1c4   :  { %v169_v2 = vmul.f32 %v276_v1, %v167_v0  ;;  %vm175_vm6 = vweird.f32 %v276_v1 }
 0x1c5   :  { %vm176_vm8 = vmor %vm174_vm7, %vm175_vm6 }
 0x1c6   :  { %v170_v3 = vmul.f32 %v276_v1, %v169_v2 }
 0x1c8   :  { %v171_v4 = vmul.f32 0.5, %v170_v3 }
 0x1ca   :  { %v172_v5 = vsub.f32 1.5, %v171_v4 }
 0x1cc   :  { %v173_v6 = vmul.f32 %v276_v1, %v172_v5 }
 0x1ce   :  { %v177_v8 = vsel %vm176_vm8, %v276_v1, %v173_v6 }
 0x1cf   :  { %v178_v9 = vmul.f32 %v177_v8, %v161_v57 }
 0x1d1   :  { %v183_v11 = vmul.f32 %v268_v7, %v178_v9 }
 0x1d3   :  { %v188_v12 = vadd.f32 %v269_v10, %v183_v11 }
 0x1d5   :  { %v189_v13 = vpack.c.bf16 %v188_v12, %v188_v12 }
 0x1d7   :  { %255 = vmatmul.msk.bf16.vlgmr.msra.gmra.mxu1 %vm82_vm0, %v189_v13 }
 0x254   :  { %v222_v15 = vpop.f32.mrf.mxu1 }
 0x255   :  { %v223_v16 = vadd.f32 %v270_v14, %v222_v15 }
 0x257   :  { %226 = vst [vmem:[#allocation8] sm:$0xff] %v223_v16 }
 0x258   :  { %237 = dma.vmem_to_hbm [thread:$0]  %s233_s25, 128, %s235_s3, [#allocation4]  }
 0x25c   :  { %v224_v17 = vpop.f32.mrf.mxu1 }
 0x25d   :  { %377 = dma.done.wait [#allocation4], 128  }
 0x25e   :  { %378 = vsyncadd [#allocation4], 4294967168 }
 0x25f   :  { %242 = vsyncpa [#allocation3], 1 }
 0x260   :  { %243 = vsyncpa [#allocation6], 1 }
 0x261   :  { %244 = vsyncpa [#allocation4], 1 }

</bundles_post_ra>
